<compile_context>
chip_gen: v7x
topology: tpu7x:2x2x1
jax: 0.10.0
libtpu: 0.0.40
codegen_flags: <defaults>
</compile_context>

<pallas_src>
import math

import jax
import jax.numpy as jnp
from jax.experimental import pallas as pl
from jax.experimental.pallas import tpu as pltpu

# ---- model hyper-parameters (small, consistent with the module) ----
B = 2        # batch
S = 8        # sequence length
D = 32       # d_model ("size")
H = 4        # attention heads
DK = D // H  # per-head dim
F = 64       # feed-forward hidden dim
EPS = 1e-6


def _layer_norm(v, a, b):
    """torch-style LayerNorm from the module: unbiased std, eps added to std."""
    mean = jnp.mean(v, axis=-1, keepdims=True)
    var = jnp.sum((v - mean) ** 2, axis=-1, keepdims=True) * (1.0 / (v.shape[-1] - 1))
    inv = pl.reciprocal(jnp.sqrt(var) + EPS, approx=False)
    return a * (v - mean) * inv + b


def encoder_layer_kernel(x_ref, wbig_ref, w2_ref, slab_ref, o_ref):
    x = x_ref[...].astype(jnp.float32)            # (B*S, D)
    wbig = wbig_ref[...].astype(jnp.float32)      # (D, 3D + D + F)
    slab = slab_ref[...].astype(jnp.float32)      # (8, 3D) packed small vectors

    # --- unpack fused weight slab: [Wqkv | Wo | W1] ---
    w_qkv = wbig[:, 0:3 * D]                      # (D, 3D), Q slice pre-scaled
    wo = wbig[:, 3 * D:4 * D]                     # (D, D)
    w1 = wbig[:, 4 * D:4 * D + F]                 # (D, F)

    # --- unpack small-vector slab ---
    b_qkv = slab[0:1, 0:3 * D]
    b1 = slab[1:2, 0:F]
    ln1a, ln1b = slab[2:3, 0:D], slab[3:4, 0:D]
    ln2a, ln2b = slab[4:5, 0:D], slab[5:6, 0:D]
    bo, b2 = slab[6:7, 0:D], slab[7:8, 0:D]

    # -------- sublayer 0: pre-norm + multi-head self-attention + residual ----
    xn = _layer_norm(x, ln1a, ln1b)

    qkv = jnp.dot(xn, w_qkv, preferred_element_type=jnp.float32) + b_qkv
    q = qkv[:, 0 * D:1 * D].reshape(B, S, D)
    k = qkv[:, 1 * D:2 * D].reshape(B, S, D)
    v = qkv[:, 2 * D:3 * D].reshape(B, S, D)

    # Start the residual with x + output-projection bias; accumulate each head's
    # contribution through its (DK, D) slice of Wo (no lane-dim concat).
    x1 = x + bo
    for h in range(H):                            # H=4, static unroll
        sl = slice(h * DK, (h + 1) * DK)
        qh, kh, vh = q[:, :, sl], k[:, :, sl], v[:, :, sl]          # (B, S, DK)
        s = jnp.einsum('bqd,bkd->bqk', qh, kh,
                       preferred_element_type=jnp.float32)          # (B, S, S)
        s = s - jnp.max(s, axis=-1, keepdims=True)
        p = jnp.exp(s)
        p = p * pl.reciprocal(jnp.sum(p, axis=-1, keepdims=True), approx=False)
        ctx = jnp.einsum('bqk,bkd->bqd', p, vh,
                         preferred_element_type=jnp.float32)        # (B, S, DK)
        x1 = x1 + jnp.dot(ctx.reshape(B * S, DK), wo[sl, :],
                          preferred_element_type=jnp.float32)

    # -------- sublayer 1: pre-norm + position-wise FFN + residual ----
    x1n = _layer_norm(x1, ln2a, ln2b)
    hid = jnp.dot(x1n, w1, preferred_element_type=jnp.float32) + b1
    hid = jnp.maximum(hid, 0.0)
    ff = jnp.dot(hid, w2_ref[...].astype(jnp.float32),
                 preferred_element_type=jnp.float32) + b2

    o_ref[...] = (x1 + ff).astype(o_ref.dtype)


def prepare_params(params):
    """One-time host-side parameter fusion: fused QKV (scale folded), fused
    weight slab [Wqkv | Wo | W1], and one (8, 3D) slab of all small vectors."""
    (ln1a, ln1b, wq, bq, wk, bk, wv, bv, wo, bo,
     ln2a, ln2b, w1, b1, w2, b2) = params
    scale = 1.0 / math.sqrt(DK)
    w_qkv = jnp.concatenate([wq * scale, wk, wv], axis=1)            # (D, 3D)
    wbig = jnp.concatenate([w_qkv, wo, w1], axis=1)                  # (D, 3D+D+F)
    b_qkv = jnp.concatenate([bq * scale, bk, bv], axis=1)            # (1, 3D)

    def pad(v):
        return jnp.pad(v, ((0, 0), (0, 3 * D - v.shape[1])))

    slab = jnp.concatenate(
        [b_qkv, pad(b1), pad(ln1a), pad(ln1b),
         pad(ln2a), pad(ln2b), pad(bo), pad(b2)], axis=0)            # (8, 3D)
    return wbig, w2, slab


def encoder_layer(x, params):
    wbig, w2, slab = prepare_params(params)
    x2d = x.reshape(B * S, D)                      # free reshape in XLA
    inputs = (x2d, wbig, w2, slab)                 # 4 DMAs total

    out = pl.pallas_call(
        encoder_layer_kernel,
        out_shape=jax.ShapeDtypeStruct((B * S, D), x.dtype),
        grid_spec=pltpu.PrefetchScalarGridSpec(
            num_scalar_prefetch=0,
            grid=(1,),                              # single step: everything at once
            in_specs=[pl.BlockSpec(a.shape, lambda i: (0, 0)) for a in inputs],
            out_specs=pl.BlockSpec((B * S, D), lambda i: (0, 0)),
        ),
        compiler_params=pltpu.CompilerParams(
            dimension_semantics=("arbitrary",)),
    )(*inputs)
    return out.reshape(B, S, D)


def make_params(key):
    ks = jax.random.split(key, 8)
    scale = 0.1
    ln1a = jnp.ones((1, D), jnp.float32)
    ln1b = jnp.zeros((1, D), jnp.float32)
    ln2a = jnp.ones((1, D), jnp.float32)
    ln2b = jnp.zeros((1, D), jnp.float32)
    wq = scale * jax.random.normal(ks[0], (D, D), jnp.float32)
    wk = scale * jax.random.normal(ks[1], (D, D), jnp.float32)
    wv = scale * jax.random.normal(ks[2], (D, D), jnp.float32)
    wo = scale * jax.random.normal(ks[3], (D, D), jnp.float32)
    bq = scale * jax.random.normal(ks[4], (1, D), jnp.float32)
    bk = scale * jax.random.normal(ks[5], (1, D), jnp.float32)
    bv = scale * jax.random.normal(ks[6], (1, D), jnp.float32)
    bo = jnp.zeros((1, D), jnp.float32)
    w1 = scale * jax.random.normal(ks[7], (D, F), jnp.float32)
    b1 = jnp.zeros((1, F), jnp.float32)
    w2 = scale * jax.random.normal(jax.random.fold_in(key, 99), (F, D), jnp.float32)
    b2 = jnp.zeros((1, D), jnp.float32)
    return (ln1a, ln1b, wq, bq, wk, bk, wv, bv, wo, bo,
            ln2a, ln2b, w1, b1, w2, b2)


def encoder_layer_ref(x, params):
    """Pure-JAX reference mirroring the PyTorch forward (dropout = identity)."""
    (ln1a, ln1b, wq, bq, wk, bk, wv, bv, wo, bo,
     ln2a, ln2b, w1, b1, w2, b2) = params

    def ln(v, a, b):
        mean = jnp.mean(v, axis=-1, keepdims=True)
        var = jnp.sum((v - mean) ** 2, axis=-1, keepdims=True) / (v.shape[-1] - 1)
        return a[0] * (v - mean) / (jnp.sqrt(var) + EPS) + b[0]

    xn = ln(x, ln1a, ln1b)
    q = xn @ wq + bq[0]
    k = xn @ wk + bk[0]
    v = xn @ wv + bv[0]
    qh = q.reshape(B, S, H, DK).transpose(0, 2, 1, 3)
    kh = k.reshape(B, S, H, DK).transpose(0, 2, 1, 3)
    vh = v.reshape(B, S, H, DK).transpose(0, 2, 1, 3)
    scores = jnp.einsum("bhqd,bhkd->bhqk", qh, kh) / math.sqrt(DK)
    p = jax.nn.softmax(scores, axis=-1)
    attn = jnp.einsum("bhqk,bhkd->bhqd", p, vh).transpose(0, 2, 1, 3).reshape(B, S, D)
    attn = attn @ wo + bo[0]
    x1 = x + attn
    x1n = ln(x1, ln2a, ln2b)
    ff = jnp.maximum(x1n @ w1 + b1[0], 0.0) @ w2 + b2[0]
    return x1 + ff


if __name__ == "__main__":
    key = jax.random.PRNGKey(0)
    kx, kp = jax.random.split(key)
    x = jax.random.normal(kx, (B, S, D), jnp.float32)
    params = make_params(kp)

    out = encoder_layer(x, params)
    out = jax.block_until_ready(out)

    ref = encoder_layer_ref(x, params)
    assert out.shape == (B, S, D)
    assert jnp.allclose(out, ref, atol=1e-4, rtol=1e-4), (
        float(jnp.max(jnp.abs(out - ref))))
    print("KERNEL_OK")
</pallas_src>

<mosaic_0001>
module attributes {stable_mosaic.version = 11 : i64} {
  func.func @encoder_layer_kernel(%arg0: i32, %arg1: memref<16x32xf32, #tpu.memory_space<vmem>>, %arg2: memref<32x192xf32, #tpu.memory_space<vmem>>, %arg3: memref<64x32xf32, #tpu.memory_space<vmem>>, %arg4: memref<8x96xf32, #tpu.memory_space<vmem>>, %arg5: memref<16x32xf32, #tpu.memory_space<vmem>>) attributes {dimension_semantics = [#tpu.dimension_semantics<arbitrary>], iteration_bounds = array<i64: 1>, scalar_prefetch = 0 : i64, scratch_operands = 0 : i64, tpu.core_type = #tpu.core_type<tc>, window_params = [{pipeline_mode = #tpu.pipeline_mode<synchronous>, transform_indices = @transform_0, window_bounds = array<i64: 16, 32>}, {pipeline_mode = #tpu.pipeline_mode<synchronous>, transform_indices = @transform_1, window_bounds = array<i64: 32, 192>}, {pipeline_mode = #tpu.pipeline_mode<synchronous>, transform_indices = @transform_2, window_bounds = array<i64: 64, 32>}, {pipeline_mode = #tpu.pipeline_mode<synchronous>, transform_indices = @transform_3, window_bounds = array<i64: 8, 96>}, {pipeline_mode = #tpu.pipeline_mode<synchronous>, transform_indices = @transform_4, window_bounds = array<i64: 16, 32>}]} {
    %c0 = arith.constant 0 : index
    %c0_0 = arith.constant 0 : index
    %0 = vector.load %arg1[%c0, %c0_0] : memref<16x32xf32, #tpu.memory_space<vmem>>, vector<16x32xf32>
    %c0_1 = arith.constant 0 : index
    %c0_2 = arith.constant 0 : index
    %1 = vector.load %arg2[%c0_1, %c0_2] : memref<32x192xf32, #tpu.memory_space<vmem>>, vector<32x192xf32>
    %c0_3 = arith.constant 0 : index
    %c0_4 = arith.constant 0 : index
    %2 = vector.load %arg4[%c0_3, %c0_4] : memref<8x96xf32, #tpu.memory_space<vmem>>, vector<8x96xf32>
    %3 = vector.extract_strided_slice %1 {offsets = [0, 0], sizes = [32, 96], strides = [1, 1]} : vector<32x192xf32> to vector<32x96xf32>
    %4 = vector.extract_strided_slice %1 {offsets = [0, 96], sizes = [32, 32], strides = [1, 1]} : vector<32x192xf32> to vector<32x32xf32>
    %5 = vector.extract_strided_slice %1 {offsets = [0, 128], sizes = [32, 64], strides = [1, 1]} : vector<32x192xf32> to vector<32x64xf32>
    %6 = vector.extract_strided_slice %2 {offsets = [0, 0], sizes = [1, 96], strides = [1, 1]} : vector<8x96xf32> to vector<1x96xf32>
    %7 = vector.extract_strided_slice %2 {offsets = [1, 0], sizes = [1, 64], strides = [1, 1]} : vector<8x96xf32> to vector<1x64xf32>
    %8 = vector.extract_strided_slice %2 {offsets = [2, 0], sizes = [1, 32], strides = [1, 1]} : vector<8x96xf32> to vector<1x32xf32>
    %9 = vector.extract_strided_slice %2 {offsets = [3, 0], sizes = [1, 32], strides = [1, 1]} : vector<8x96xf32> to vector<1x32xf32>
    %10 = vector.extract_strided_slice %2 {offsets = [4, 0], sizes = [1, 32], strides = [1, 1]} : vector<8x96xf32> to vector<1x32xf32>
    %11 = vector.extract_strided_slice %2 {offsets = [5, 0], sizes = [1, 32], strides = [1, 1]} : vector<8x96xf32> to vector<1x32xf32>
    %12 = vector.extract_strided_slice %2 {offsets = [6, 0], sizes = [1, 32], strides = [1, 1]} : vector<8x96xf32> to vector<1x32xf32>
    %13 = vector.extract_strided_slice %2 {offsets = [7, 0], sizes = [1, 32], strides = [1, 1]} : vector<8x96xf32> to vector<1x32xf32>
    %cst = arith.constant dense<0.000000e+00> : vector<16xf32>
    %14 = vector.multi_reduction <add>, %0, %cst [1] : vector<16x32xf32> to vector<16xf32>
    %15 = vector.shape_cast %14 : vector<16xf32> to vector<16x1xf32>
    %cst_5 = arith.constant 3.200000e+01 : f32
    %16 = vector.broadcast %cst_5 : f32 to vector<16x1xf32>
    %17 = arith.divf %15, %16 : vector<16x1xf32>
    %18 = vector.broadcast %17 : vector<16x1xf32> to vector<16x32xf32>
    %19 = arith.subf %0, %18 : vector<16x32xf32>
    %20 = arith.mulf %19, %19 : vector<16x32xf32>
    %cst_6 = arith.constant dense<0.000000e+00> : vector<16xf32>
    %21 = vector.multi_reduction <add>, %20, %cst_6 [1] : vector<16x32xf32> to vector<16xf32>
    %22 = vector.shape_cast %21 : vector<16xf32> to vector<16x1xf32>
    %cst_7 = arith.constant 0.0322580636 : f32
    %23 = vector.broadcast %cst_7 : f32 to vector<16x1xf32>
    %24 = arith.mulf %22, %23 : vector<16x1xf32>
    %25 = math.sqrt %24 : vector<16x1xf32>
    %cst_8 = arith.constant 9.99999997E-7 : f32
    %26 = vector.broadcast %cst_8 : f32 to vector<16x1xf32>
    %27 = arith.addf %25, %26 : vector<16x1xf32>
    %28 = tpu.reciprocal %27 : vector<16x1xf32> -> vector<16x1xf32>
    %29 = vector.broadcast %17 : vector<16x1xf32> to vector<16x32xf32>
    %30 = arith.subf %0, %29 : vector<16x32xf32>
    %31 = vector.broadcast %8 : vector<1x32xf32> to vector<16x32xf32>
    %32 = arith.mulf %31, %30 : vector<16x32xf32>
    %33 = vector.broadcast %28 : vector<16x1xf32> to vector<16x32xf32>
    %34 = arith.mulf %32, %33 : vector<16x32xf32>
    %35 = vector.broadcast %9 : vector<1x32xf32> to vector<16x32xf32>
    %36 = arith.addf %34, %35 : vector<16x32xf32>
    %cst_9 = arith.constant dense<0.000000e+00> : vector<16x96xf32>
    %37 = tpu.matmul %36, %3, %cst_9 {dimension_numbers = #tpu.dot_dimension_numbers<[1], [0], [0], [1], [0, 0, 1, 1], [], []>} : vector<16x32xf32>, vector<32x96xf32>, vector<16x96xf32> -> vector<16x96xf32>
    %38 = vector.broadcast %6 : vector<1x96xf32> to vector<16x96xf32>
    %39 = arith.addf %37, %38 : vector<16x96xf32>
    %40 = vector.extract_strided_slice %39 {offsets = [0, 0], sizes = [16, 32], strides = [1, 1]} : vector<16x96xf32> to vector<16x32xf32>
    %41 = vector.shape_cast %40 : vector<16x32xf32> to vector<2x8x32xf32>
    %42 = vector.extract_strided_slice %39 {offsets = [0, 32], sizes = [16, 32], strides = [1, 1]} : vector<16x96xf32> to vector<16x32xf32>
    %43 = vector.shape_cast %42 : vector<16x32xf32> to vector<2x8x32xf32>
    %44 = vector.extract_strided_slice %39 {offsets = [0, 64], sizes = [16, 32], strides = [1, 1]} : vector<16x96xf32> to vector<16x32xf32>
    %45 = vector.shape_cast %44 : vector<16x32xf32> to vector<2x8x32xf32>
    %46 = vector.broadcast %12 : vector<1x32xf32> to vector<16x32xf32>
    %47 = arith.addf %0, %46 : vector<16x32xf32>
    %48 = vector.extract_strided_slice %41 {offsets = [0, 0, 0], sizes = [2, 8, 8], strides = [1, 1, 1]} : vector<2x8x32xf32> to vector<2x8x8xf32>
    %49 = vector.extract_strided_slice %43 {offsets = [0, 0, 0], sizes = [2, 8, 8], strides = [1, 1, 1]} : vector<2x8x32xf32> to vector<2x8x8xf32>
    %50 = vector.extract_strided_slice %45 {offsets = [0, 0, 0], sizes = [2, 8, 8], strides = [1, 1, 1]} : vector<2x8x32xf32> to vector<2x8x8xf32>
    "tpu.trace_start"() <{level = 10 : i32, message = "bqd,bkd->bqk"}> : () -> ()
    %cst_10 = arith.constant dense<0.000000e+00> : vector<2x8x8xf32>
    %51 = tpu.matmul %48, %49, %cst_10 {dimension_numbers = #tpu.dot_dimension_numbers<[2], [2], [1], [1], [0, 0, 0, 1, 1, 1], [0], [0]>} : vector<2x8x8xf32>, vector<2x8x8xf32>, vector<2x8x8xf32> -> vector<2x8x8xf32>
    "tpu.trace_stop"() : () -> ()
    %cst_11 = arith.constant dense<0xFF800000> : vector<2x8xf32>
    %52 = vector.multi_reduction <maximumf>, %51, %cst_11 [2] : vector<2x8x8xf32> to vector<2x8xf32>
    %53 = vector.shape_cast %52 : vector<2x8xf32> to vector<2x8x1xf32>
    %54 = vector.broadcast %53 : vector<2x8x1xf32> to vector<2x8x8xf32>
    %55 = arith.subf %51, %54 : vector<2x8x8xf32>
    %56 = math.exp %55 : vector<2x8x8xf32>
    %cst_12 = arith.constant dense<0.000000e+00> : vector<2x8xf32>
    %57 = vector.multi_reduction <add>, %56, %cst_12 [2] : vector<2x8x8xf32> to vector<2x8xf32>
    %58 = vector.shape_cast %57 : vector<2x8xf32> to vector<2x8x1xf32>
    %59 = tpu.reciprocal %58 : vector<2x8x1xf32> -> vector<2x8x1xf32>
    %60 = vector.broadcast %59 : vector<2x8x1xf32> to vector<2x8x8xf32>
    %61 = arith.mulf %56, %60 : vector<2x8x8xf32>
    "tpu.trace_start"() <{level = 10 : i32, message = "bqk,bkd->bqd"}> : () -> ()
    %cst_13 = arith.constant dense<0.000000e+00> : vector<2x8x8xf32>
    %62 = tpu.matmul %61, %50, %cst_13 {dimension_numbers = #tpu.dot_dimension_numbers<[2], [1], [1], [2], [0, 0, 0, 1, 1, 2], [0], [0]>} : vector<2x8x8xf32>, vector<2x8x8xf32>, vector<2x8x8xf32> -> vector<2x8x8xf32>
    "tpu.trace_stop"() : () -> ()
    %63 = vector.shape_cast %62 : vector<2x8x8xf32> to vector<16x8xf32>
    %64 = vector.extract_strided_slice %4 {offsets = [0, 0], sizes = [8, 32], strides = [1, 1]} : vector<32x32xf32> to vector<8x32xf32>
    %cst_14 = arith.constant dense<0.000000e+00> : vector<16x32xf32>
    %65 = tpu.matmul %63, %64, %cst_14 {dimension_numbers = #tpu.dot_dimension_numbers<[1], [0], [0], [1], [0, 0, 1, 1], [], []>} : vector<16x8xf32>, vector<8x32xf32>, vector<16x32xf32> -> vector<16x32xf32>
    %66 = arith.addf %47, %65 : vector<16x32xf32>
    %67 = vector.extract_strided_slice %41 {offsets = [0, 0, 8], sizes = [2, 8, 8], strides = [1, 1, 1]} : vector<2x8x32xf32> to vector<2x8x8xf32>
    %68 = vector.extract_strided_slice %43 {offsets = [0, 0, 8], sizes = [2, 8, 8], strides = [1, 1, 1]} : vector<2x8x32xf32> to vector<2x8x8xf32>
    %69 = vector.extract_strided_slice %45 {offsets = [0, 0, 8], sizes = [2, 8, 8], strides = [1, 1, 1]} : vector<2x8x32xf32> to vector<2x8x8xf32>
    "tpu.trace_start"() <{level = 10 : i32, message = "bqd,bkd->bqk"}> : () -> ()
    %cst_15 = arith.constant dense<0.000000e+00> : vector<2x8x8xf32>
    %70 = tpu.matmul %67, %68, %cst_15 {dimension_numbers = #tpu.dot_dimension_numbers<[2], [2], [1], [1], [0, 0, 0, 1, 1, 1], [0], [0]>} : vector<2x8x8xf32>, vector<2x8x8xf32>, vector<2x8x8xf32> -> vector<2x8x8xf32>
    "tpu.trace_stop"() : () -> ()
    %cst_16 = arith.constant dense<0xFF800000> : vector<2x8xf32>
    %71 = vector.multi_reduction <maximumf>, %70, %cst_16 [2] : vector<2x8x8xf32> to vector<2x8xf32>
    %72 = vector.shape_cast %71 : vector<2x8xf32> to vector<2x8x1xf32>
    %73 = vector.broadcast %72 : vector<2x8x1xf32> to vector<2x8x8xf32>
    %74 = arith.subf %70, %73 : vector<2x8x8xf32>
    %75 = math.exp %74 : vector<2x8x8xf32>
    %cst_17 = arith.constant dense<0.000000e+00> : vector<2x8xf32>
    %76 = vector.multi_reduction <add>, %75, %cst_17 [2] : vector<2x8x8xf32> to vector<2x8xf32>
    %77 = vector.shape_cast %76 : vector<2x8xf32> to vector<2x8x1xf32>
    %78 = tpu.reciprocal %77 : vector<2x8x1xf32> -> vector<2x8x1xf32>
    %79 = vector.broadcast %78 : vector<2x8x1xf32> to vector<2x8x8xf32>
    %80 = arith.mulf %75, %79 : vector<2x8x8xf32>
    "tpu.trace_start"() <{level = 10 : i32, message = "bqk,bkd->bqd"}> : () -> ()
    %cst_18 = arith.constant dense<0.000000e+00> : vector<2x8x8xf32>
    %81 = tpu.matmul %80, %69, %cst_18 {dimension_numbers = #tpu.dot_dimension_numbers<[2], [1], [1], [2], [0, 0, 0, 1, 1, 2], [0], [0]>} : vector<2x8x8xf32>, vector<2x8x8xf32>, vector<2x8x8xf32> -> vector<2x8x8xf32>
    "tpu.trace_stop"() : () -> ()
    %82 = vector.shape_cast %81 : vector<2x8x8xf32> to vector<16x8xf32>
    %83 = vector.extract_strided_slice %4 {offsets = [8, 0], sizes = [8, 32], strides = [1, 1]} : vector<32x32xf32> to vector<8x32xf32>
    %cst_19 = arith.constant dense<0.000000e+00> : vector<16x32xf32>
    %84 = tpu.matmul %82, %83, %cst_19 {dimension_numbers = #tpu.dot_dimension_numbers<[1], [0], [0], [1], [0, 0, 1, 1], [], []>} : vector<16x8xf32>, vector<8x32xf32>, vector<16x32xf32> -> vector<16x32xf32>
    %85 = arith.addf %66, %84 : vector<16x32xf32>
    %86 = vector.extract_strided_slice %41 {offsets = [0, 0, 16], sizes = [2, 8, 8], strides = [1, 1, 1]} : vector<2x8x32xf32> to vector<2x8x8xf32>
    %87 = vector.extract_strided_slice %43 {offsets = [0, 0, 16], sizes = [2, 8, 8], strides = [1, 1, 1]} : vector<2x8x32xf32> to vector<2x8x8xf32>
    %88 = vector.extract_strided_slice %45 {offsets = [0, 0, 16], sizes = [2, 8, 8], strides = [1, 1, 1]} : vector<2x8x32xf32> to vector<2x8x8xf32>
    "tpu.trace_start"() <{level = 10 : i32, message = "bqd,bkd->bqk"}> : () -> ()
    %cst_20 = arith.constant dense<0.000000e+00> : vector<2x8x8xf32>
    %89 = tpu.matmul %86, %87, %cst_20 {dimension_numbers = #tpu.dot_dimension_numbers<[2], [2], [1], [1], [0, 0, 0, 1, 1, 1], [0], [0]>} : vector<2x8x8xf32>, vector<2x8x8xf32>, vector<2x8x8xf32> -> vector<2x8x8xf32>
    "tpu.trace_stop"() : () -> ()
    %cst_21 = arith.constant dense<0xFF800000> : vector<2x8xf32>
    %90 = vector.multi_reduction <maximumf>, %89, %cst_21 [2] : vector<2x8x8xf32> to vector<2x8xf32>
    %91 = vector.shape_cast %90 : vector<2x8xf32> to vector<2x8x1xf32>
    %92 = vector.broadcast %91 : vector<2x8x1xf32> to vector<2x8x8xf32>
    %93 = arith.subf %89, %92 : vector<2x8x8xf32>
    %94 = math.exp %93 : vector<2x8x8xf32>
    %cst_22 = arith.constant dense<0.000000e+00> : vector<2x8xf32>
    %95 = vector.multi_reduction <add>, %94, %cst_22 [2] : vector<2x8x8xf32> to vector<2x8xf32>
    %96 = vector.shape_cast %95 : vector<2x8xf32> to vector<2x8x1xf32>
    %97 = tpu.reciprocal %96 : vector<2x8x1xf32> -> vector<2x8x1xf32>
    %98 = vector.broadcast %97 : vector<2x8x1xf32> to vector<2x8x8xf32>
    %99 = arith.mulf %94, %98 : vector<2x8x8xf32>
    "tpu.trace_start"() <{level = 10 : i32, message = "bqk,bkd->bqd"}> : () -> ()
    %cst_23 = arith.constant dense<0.000000e+00> : vector<2x8x8xf32>
    %100 = tpu.matmul %99, %88, %cst_23 {dimension_numbers = #tpu.dot_dimension_numbers<[2], [1], [1], [2], [0, 0, 0, 1, 1, 2], [0], [0]>} : vector<2x8x8xf32>, vector<2x8x8xf32>, vector<2x8x8xf32> -> vector<2x8x8xf32>
    "tpu.trace_stop"() : () -> ()
    %101 = vector.shape_cast %100 : vector<2x8x8xf32> to vector<16x8xf32>
    %102 = vector.extract_strided_slice %4 {offsets = [16, 0], sizes = [8, 32], strides = [1, 1]} : vector<32x32xf32> to vector<8x32xf32>
    %cst_24 = arith.constant dense<0.000000e+00> : vector<16x32xf32>
    %103 = tpu.matmul %101, %102, %cst_24 {dimension_numbers = #tpu.dot_dimension_numbers<[1], [0], [0], [1], [0, 0, 1, 1], [], []>} : vector<16x8xf32>, vector<8x32xf32>, vector<16x32xf32> -> vector<16x32xf32>
    %104 = arith.addf %85, %103 : vector<16x32xf32>
    %105 = vector.extract_strided_slice %41 {offsets = [0, 0, 24], sizes = [2, 8, 8], strides = [1, 1, 1]} : vector<2x8x32xf32> to vector<2x8x8xf32>
    %106 = vector.extract_strided_slice %43 {offsets = [0, 0, 24], sizes = [2, 8, 8], strides = [1, 1, 1]} : vector<2x8x32xf32> to vector<2x8x8xf32>
    %107 = vector.extract_strided_slice %45 {offsets = [0, 0, 24], sizes = [2, 8, 8], strides = [1, 1, 1]} : vector<2x8x32xf32> to vector<2x8x8xf32>
    "tpu.trace_start"() <{level = 10 : i32, message = "bqd,bkd->bqk"}> : () -> ()
    %cst_25 = arith.constant dense<0.000000e+00> : vector<2x8x8xf32>
    %108 = tpu.matmul %105, %106, %cst_25 {dimension_numbers = #tpu.dot_dimension_numbers<[2], [2], [1], [1], [0, 0, 0, 1, 1, 1], [0], [0]>} : vector<2x8x8xf32>, vector<2x8x8xf32>, vector<2x8x8xf32> -> vector<2x8x8xf32>
    "tpu.trace_stop"() : () -> ()
    %cst_26 = arith.constant dense<0xFF800000> : vector<2x8xf32>
    %109 = vector.multi_reduction <maximumf>, %108, %cst_26 [2] : vector<2x8x8xf32> to vector<2x8xf32>
    %110 = vector.shape_cast %109 : vector<2x8xf32> to vector<2x8x1xf32>
    %111 = vector.broadcast %110 : vector<2x8x1xf32> to vector<2x8x8xf32>
    %112 = arith.subf %108, %111 : vector<2x8x8xf32>
    %113 = math.exp %112 : vector<2x8x8xf32>
    %cst_27 = arith.constant dense<0.000000e+00> : vector<2x8xf32>
    %114 = vector.multi_reduction <add>, %113, %cst_27 [2] : vector<2x8x8xf32> to vector<2x8xf32>
    %115 = vector.shape_cast %114 : vector<2x8xf32> to vector<2x8x1xf32>
    %116 = tpu.reciprocal %115 : vector<2x8x1xf32> -> vector<2x8x1xf32>
    %117 = vector.broadcast %116 : vector<2x8x1xf32> to vector<2x8x8xf32>
    %118 = arith.mulf %113, %117 : vector<2x8x8xf32>
    "tpu.trace_start"() <{level = 10 : i32, message = "bqk,bkd->bqd"}> : () -> ()
    %cst_28 = arith.constant dense<0.000000e+00> : vector<2x8x8xf32>
    %119 = tpu.matmul %118, %107, %cst_28 {dimension_numbers = #tpu.dot_dimension_numbers<[2], [1], [1], [2], [0, 0, 0, 1, 1, 2], [0], [0]>} : vector<2x8x8xf32>, vector<2x8x8xf32>, vector<2x8x8xf32> -> vector<2x8x8xf32>
    "tpu.trace_stop"() : () -> ()
    %120 = vector.shape_cast %119 : vector<2x8x8xf32> to vector<16x8xf32>
    %121 = vector.extract_strided_slice %4 {offsets = [24, 0], sizes = [8, 32], strides = [1, 1]} : vector<32x32xf32> to vector<8x32xf32>
    %cst_29 = arith.constant dense<0.000000e+00> : vector<16x32xf32>
    %122 = tpu.matmul %120, %121, %cst_29 {dimension_numbers = #tpu.dot_dimension_numbers<[1], [0], [0], [1], [0, 0, 1, 1], [], []>} : vector<16x8xf32>, vector<8x32xf32>, vector<16x32xf32> -> vector<16x32xf32>
    %123 = arith.addf %104, %122 : vector<16x32xf32>
    %cst_30 = arith.constant dense<0.000000e+00> : vector<16xf32>
    %124 = vector.multi_reduction <add>, %123, %cst_30 [1] : vector<16x32xf32> to vector<16xf32>
    %125 = vector.shape_cast %124 : vector<16xf32> to vector<16x1xf32>
    %cst_31 = arith.constant 3.200000e+01 : f32
    %126 = vector.broadcast %cst_31 : f32 to vector<16x1xf32>
    %127 = arith.divf %125, %126 : vector<16x1xf32>
    %128 = vector.broadcast %127 : vector<16x1xf32> to vector<16x32xf32>
    %129 = arith.subf %123, %128 : vector<16x32xf32>
    %130 = arith.mulf %129, %129 : vector<16x32xf32>
    %cst_32 = arith.constant dense<0.000000e+00> : vector<16xf32>
    %131 = vector.multi_reduction <add>, %130, %cst_32 [1] : vector<16x32xf32> to vector<16xf32>
    %132 = vector.shape_cast %131 : vector<16xf32> to vector<16x1xf32>
    %cst_33 = arith.constant 0.0322580636 : f32
    %133 = vector.broadcast %cst_33 : f32 to vector<16x1xf32>
    %134 = arith.mulf %132, %133 : vector<16x1xf32>
    %135 = math.sqrt %134 : vector<16x1xf32>
    %cst_34 = arith.constant 9.99999997E-7 : f32
    %136 = vector.broadcast %cst_34 : f32 to vector<16x1xf32>
    %137 = arith.addf %135, %136 : vector<16x1xf32>
    %138 = tpu.reciprocal %137 : vector<16x1xf32> -> vector<16x1xf32>
    %139 = vector.broadcast %127 : vector<16x1xf32> to vector<16x32xf32>
    %140 = arith.subf %123, %139 : vector<16x32xf32>
    %141 = vector.broadcast %10 : vector<1x32xf32> to vector<16x32xf32>
    %142 = arith.mulf %141, %140 : vector<16x32xf32>
    %143 = vector.broadcast %138 : vector<16x1xf32> to vector<16x32xf32>
    %144 = arith.mulf %142, %143 : vector<16x32xf32>
    %145 = vector.broadcast %11 : vector<1x32xf32> to vector<16x32xf32>
    %146 = arith.addf %144, %145 : vector<16x32xf32>
    %cst_35 = arith.constant dense<0.000000e+00> : vector<16x64xf32>
    %147 = tpu.matmul %146, %5, %cst_35 {dimension_numbers = #tpu.dot_dimension_numbers<[1], [0], [0], [1], [0, 0, 1, 1], [], []>} : vector<16x32xf32>, vector<32x64xf32>, vector<16x64xf32> -> vector<16x64xf32>
    %148 = vector.broadcast %7 : vector<1x64xf32> to vector<16x64xf32>
    %149 = arith.addf %147, %148 : vector<16x64xf32>
    %cst_36 = arith.constant 0.000000e+00 : f32
    %150 = vector.broadcast %cst_36 : f32 to vector<16x64xf32>
    %151 = arith.maximumf %149, %150 : vector<16x64xf32>
    %c0_37 = arith.constant 0 : index
    %c0_38 = arith.constant 0 : index
    %152 = vector.load %arg3[%c0_37, %c0_38] : memref<64x32xf32, #tpu.memory_space<vmem>>, vector<64x32xf32>
    %cst_39 = arith.constant dense<0.000000e+00> : vector<16x32xf32>
    %153 = tpu.matmul %151, %152, %cst_39 {dimension_numbers = #tpu.dot_dimension_numbers<[1], [0], [0], [1], [0, 0, 1, 1], [], []>} : vector<16x64xf32>, vector<64x32xf32>, vector<16x32xf32> -> vector<16x32xf32>
    %154 = vector.broadcast %13 : vector<1x32xf32> to vector<16x32xf32>
    %155 = arith.addf %153, %154 : vector<16x32xf32>
    %156 = arith.addf %123, %155 : vector<16x32xf32>
    %c0_40 = arith.constant 0 : index
    %c0_41 = arith.constant 0 : index
    %157 = vector.load %arg5[%c0_40, %c0_41] : memref<16x32xf32, #tpu.memory_space<vmem>>, vector<16x32xf32>
    tpu.vector_store %arg5[%c0_40, %c0_41], %156 {strides = array<i32>} : memref<16x32xf32, #tpu.memory_space<vmem>>, vector<16x32xf32>,
    return
  }
  func.func @transform_0(%arg0: i32) -> (i32, i32) {
    %c0_i32 = arith.constant 0 : i32
    %c0_i32_0 = arith.constant 0 : i32
    %c0_i32_1 = arith.constant 0 : i32
    return %c0_i32, %c0_i32_0 : i32, i32
  }
  func.func @transform_1(%arg0: i32) -> (i32, i32) {
    %c0_i32 = arith.constant 0 : i32
    %c0_i32_0 = arith.constant 0 : i32
    %c0_i32_1 = arith.constant 0 : i32
    return %c0_i32, %c0_i32_0 : i32, i32
  }
  func.func @transform_2(%arg0: i32) -> (i32, i32) {
    %c0_i32 = arith.constant 0 : i32
    %c0_i32_0 = arith.constant 0 : i32
    %c0_i32_1 = arith.constant 0 : i32
    return %c0_i32, %c0_i32_0 : i32, i32
  }
  func.func @transform_3(%arg0: i32) -> (i32, i32) {
    %c0_i32 = arith.constant 0 : i32
    %c0_i32_0 = arith.constant 0 : i32
    %c0_i32_1 = arith.constant 0 : i32
    return %c0_i32, %c0_i32_0 : i32, i32
  }
  func.func @transform_4(%arg0: i32) -> (i32, i32) {
    %c0_i32 = arith.constant 0 : i32
    %c0_i32_0 = arith.constant 0 : i32
    %c0_i32_1 = arith.constant 0 : i32
    return %c0_i32, %c0_i32_0 : i32, i32
  }
}

</mosaic_0001>

<bundles_post_ra>
// kernel: tpu_custom_call.1
= control target key start
LH: loop header
LB: loop body
LE: loop exit
PB: predicated region body
PF: predicated region fallthrough
CT: control target
= control target key end

     0   :  { %vm29_vm0 = vcmask 261120   ;;  %s2781_s0 = inlined_call_operand.vmem [shape: f32[16,32], index: 0, kind: input, shape index: {}]   ;;  %s2782_s1 = inlined_call_operand.vmem [shape: f32[32,192], index: 1, kind: input, shape index: {}]   ;;  %s2783_s2 = inlined_call_operand.vmem [shape: f32[64,32], index: 2, kind: input, shape index: {}]   ;;  %s2784_s3 = inlined_call_operand.vmem [shape: f32[8,96], index: 3, kind: input, shape index: {}]   ;;  %s2785_s4 = inlined_call_operand.hbm [shape: f32[16,32], index: 4, kind: output, shape index: {}]  }
   0x1   :  { %v2513_v0 = vld [vmem:[%s2781_s0] sm:$0xff]  ;;  %v2518_v1 = vld [vmem:[%s2781_s0 + $0x8] sm:$0xff] }
   0x2   :  { %v30_v2 = vsel %vm29_vm0, %v2513_v0, 0.0 }
   0x3   :  { %9 = vsyncpa [#allocation3], 0  ;;  %31 = vadd.xlane.f32.xlu0 %v30_v2  ;;  %v33_v3 = vsel %vm29_vm0, %v2518_v1, 0.0  ;;  %v2531_v14 = vld [vmem:[%s2782_s1] sm:$0xff]  ;;  %v2536_v15 = vld [vmem:[%s2782_s1 + $0x10] sm:$0xff]  ;;  %v69_v25 = vlaneseq  ;;  %v2468_v51 = vmov 0.0  }
   0x4   :  { %v2541_v16 = vld [vmem:[%s2782_s1 + $0x20] sm:$0xff]  ;;  %v2339_v17 = vpack.c.bf16 %v2536_v15, %v2531_v14  ;;  %v2548_v18 = vld [vmem:[%s2782_s1 + $0x30] sm:$0xff]  ;;  %2219 = vmatprep.subr.mxu0 %v2468_v51  ;;  %vm2469_vm5 = vmmov 0   ;;  %vm177_vm6 = vcmask 64512   ;;  %s2471_s28 = smov 64   ;;  %s2472_s29 = smov 88  }
   0x5   :  { %v2343_v19 = vpack.c.bf16 %v2548_v18, %v2541_v16  ;;  %v2552_v30 = vshrl.u32 %v69_v25, 7  ;;  %v2558_v38 = vld [vmem:[%s2784_s3] sm:$0xff]  ;;  %2221 = vmatprep.mubr.msk.f32.mxu0 %vm2469_vm5, %v2468_v51  ;;  %s2470_s3 = smov 96   ;;  %s2473_s30 = smov 32   ;;  %vm1992_vm11 = vcmask 523264  }
   0x6   :  { %2340 = vmatprep.subr.bf16.mxu1 %v2339_v17  ;;  %s2474_s5 = smov 120   ;;  %s2475_s6 = smov 80  }
   0x7   :  { %34 = vadd.xlane.f32.xlu0 %v33_v3  ;;  %2342 = vmatpush3.bf16.msra.mxu1 %v2339_v17  ;;  %v71_v36 = vsub.s32 2, %v2552_v30  ;;  %v79_v41 = vsub.s32 3, %v2552_v30  ;;  %v85_v52 = vsub.s32 0, %v2552_v30  ;;  %s2476_s7 = smov 112   ;;  %s2477_s8 = smov 56  }
   0x8   :  { %2344 = vmatprep.subr.bf16.mxu1 %v2343_v19  ;;  %s2478_s9 = smov 48   ;;  %s2479_s10 = smov 72  }
   0x9   :  { %v72_v40 = vrot.slane %v2558_v38, %v71_v36  ;;  %v80_v43 = vrot.slane %v2558_v38, %v79_v41  ;;  %v86_v53 = vrot.slane %v2558_v38, %v85_v52  ;;  %s2480_s11 = smov 104   ;;  %s2481_s12 = smov 40  }
   0xb   :  { %2346 = vmatpush3.bf16.msra.mxu1 %v2343_v19 }
   0xc   :  { %2209 = vmatprep.subr.mxu1 %v2468_v51 }
  0x90   :  { %v32_v4 = vpop.xlane.xlu0 %31 }
  0x91   :  { %v37_v5 = vmul.f32 0.03125, %v32_v4 }
  0x93   :  { %v39_v6 = vsub.f32 %v2513_v0, %v37_v5 }
  0x94   :  { %v35_v7 = vpop.xlane.xlu0 %34 }
  0x95   :  { %v38_v8 = vmul.f32 0.03125, %v35_v7  ;;  %v41_v9 = vmul.f32 %v39_v6, %v39_v6  ;;  %v73_v42 = vmul.f32 %v72_v40, %v39_v6 }
  0x97   :  { %v40_v10 = vsub.f32 %v2518_v1, %v38_v8  ;;  %v43_v11 = vsel %vm29_vm0, %v41_v9, 0.0 }
  0x98   :  { %44 = vadd.xlane.f32.xlu1 %v43_v11 }
  0x99   :  { %v42_v12 = vmul.f32 %v40_v10, %v40_v10  ;;  %v74_v46 = vmul.f32 %v72_v40, %v40_v10 }
  0x9b   :  { %v46_v13 = vsel %vm29_vm0, %v42_v12, 0.0 }
  0x9c   :  { %47 = vadd.xlane.f32.xlu1 %v46_v13 }
 0x125   :  { %v45_v20 = vpop.xlane.xlu1 %44 }
 0x126   :  { %v49_v21 = vmul.f32 0.032258064, %v45_v20 }
 0x128   :  { %2396 = vrsqrt.f32 %v49_v21  ;;  %vm53_vm1 = vcmp.eq.f32.partialorder %v49_v21, inf  ;;  %v56_v27 = vand.u32 2147483648, %v49_v21  ;;  %vm55_vm2 = vcmp.eq.f32.partialorder %v49_v21, 0.0 }
 0x129   :  { %v48_v22 = vpop.xlane.xlu1 %47 }
 0x12a   :  { %v50_v23 = vmul.f32 0.032258064, %v48_v22 }
 0x12c   :  { %2398 = vrsqrt.f32 %v50_v23  ;;  %vm60_vm3 = vcmp.eq.f32.partialorder %v50_v23, inf  ;;  %v63_v34 = vand.u32 2147483648, %v50_v23  ;;  %vm62_vm4 = vcmp.eq.f32.partialorder %v50_v23, 0.0 }
 0x132   :  { %v2397_v24 = vpop.eup %2396 }
 0x133   :  { %v52_v26 = vmul.f32 %v2397_v24, %v49_v21 }
 0x135   :  { %v54_v28 = vsel %vm53_vm1, %v49_v21, %v52_v26 }
 0x136   :  { %v2399_v29 = vpop.eup %2398  ;;  %v57_v31 = vsel %vm55_vm2, %v56_v27, %v54_v28 }
 0x137   :  { %v59_v32 = vmul.f32 %v2399_v29, %v50_v23  ;;  %v65_v33 = vadd.f32 1e-06, %v57_v31 }
 0x139   :  { %v61_v35 = vsel %vm60_vm3, %v50_v23, %v59_v32  ;;  %2400 = vrcp.f32 %v65_v33 }
 0x13a   :  { %v64_v37 = vsel %vm62_vm4, %v63_v34, %v61_v35 }
 0x13b   :  { %v66_v39 = vadd.f32 1e-06, %v64_v37 }
 0x13d   :  { %2402 = vrcp.f32 %v66_v39 }
 0x143   :  { %v2401_v44 = vpop.eup %2400 }
 0x144   :  { %v75_v45 = vmul.f32 %v2401_v44, %v73_v42 }
 0x146   :  { %v81_v47 = vadd.f32 %v80_v43, %v75_v45 }
 0x147   :  { %v2403_v48 = vpop.eup %2402 }
 0x148   :  { %v76_v49 = vmul.f32 %v2403_v48, %v74_v46  ;;  %2206 = vmatprep.mubr.msk.f32.mxu1 %vm29_vm0, %v81_v47 }
 0x14a   :  { %v82_v50 = vadd.f32 %v80_v43, %v76_v49 }
 0x14c   :  { %2207 = vmatmul.mubr.msk.f32.vlgmr.msra.gmra.mrb[0].mxu1 %vm29_vm0, %v82_v50 }
 0x14d   :  { %2211 = vmatprep.mubr.msk.f32.mxu1 %vm2469_vm5, %v2468_v51 }
 0x21f   :  { %v2208_v54 = vpop.f32.mrb[0].mxu1 }
 0x220   :  { %v2573_v55 = vadd.f32 %v2208_v54, %v86_v53  ;;  %v159_v56 = vpop.f32.mrb[1].mxu1 }
 0x221   :  { %v2575_v57 = vadd.f32 %v159_v56, %v86_v53 }
 0x222   :  { %253 = vrot.lane.b32.xlu1 %v2573_v55, %s2470_s3 }
 0x223   :  { %175 = vrot.lane.b32.xlu0 %v2575_v57, %s2470_s3 }
 0x294   :  { %v254_v59 = vpop.permute.xlu1 %253 }
 0x295   :  { %v176_v58 = vpop.permute.xlu0 %175 }
 0x296   :  { %2210 = vmatpush3.xpose.msk.msra.mxu1 %vm177_vm6, %v176_v58 }
 0x297   :  { %2214 = vmatprep.subr.mxu1 %v2468_v51 }
 0x299   :  { %2212 = vmatmul.mubr.msk.f32.vlgmr.msra.gmra.mrb[2].mxu1 %vm177_vm6, %v2575_v57 }
 0x29a   :  { %2215 = vmatpush3.xpose.msk.msra.mxu1 %vm177_vm6, %v254_v59  ;;  %2216 = vmatprep.mubr.msk.f32.mxu1 %vm2469_vm5, %v2468_v51 }
 0x29b   :  { %2224 = vmatprep.subr.mxu1 %v2468_v51 }
 0x29d   :  { %2217 = vmatmul.mubr.msk.f32.vlgmr.msra.gmra.mrb[4].mxu1 %vm177_vm6, %v2573_v55 }
 0x29e   :  { %2226 = vmatprep.mubr.msk.f32.mxu1 %vm2469_vm5, %v2468_v51 }
 0x36c   :  { %v248_v60 = vpop.f32.mrb[2].mxu1 }
 0x36d   :  { %v2213_v61 = vpop.f32.mrb[3].mxu1  ;;  %v329_v62 = vsel %vm177_vm6, %v248_v60, -inf }
 0x36e   :  { %330 = vmax.xlane.f32.xlu1 %v329_v62 }
 0x370   :  { %v325_v63 = vpop.f32.mrb[4].mxu1 }
 0x371   :  { %v2218_v2 = vpop.f32.mrb[5].mxu1  ;;  %v332_v3 = vsel %vm177_vm6, %v325_v63, -inf }
 0x372   :  { %333 = vmax.xlane.f32.xlu0 %v332_v3 }
 0x3fb   :  { %v331_v4 = vpop.xlane.xlu1 %330 }
 0x3fc   :  { %v335_v5 = vsub.f32 %v248_v60, %v331_v4 }
 0x3fe   :  { %v337_v6 = vmul.f32 1.442695, %v335_v5 }
 0x3ff   :  { %v334_v7 = vpop.xlane.xlu0 %333 }
 0x400   :  { %2404 = vpow2.f32 %v337_v6  ;;  %v336_v8 = vsub.f32 %v325_v63, %v334_v7 }
 0x402   :  { %v339_v9 = vmul.f32 1.442695, %v336_v8 }
 0x404   :  { %2406 = vpow2.f32 %v339_v9 }
 0x40a   :  { %v2405_v10 = vpop.eup %2404 }
 0x40b   :  { %v341_v11 = vsel %vm177_vm6, %v2405_v10, 0.0 }
 0x40c   :  { %342 = vadd.xlane.f32.xlu0 %v341_v11 }
 0x40e   :  { %v2407_v12 = vpop.eup %2406 }
 0x40f   :  { %v344_v13 = vsel %vm177_vm6, %v2407_v12, 0.0 }
 0x410   :  { %345 = vadd.xlane.f32.xlu1 %v344_v13 }
 0x421   :  { %427 = vrot.lane.b32.xlu1 %v2573_v55, %s2471_s28 }
 0x422   :  { %351 = vrot.lane.b32.xlu0 %v2575_v57, %s2471_s28 }
 0x425   :  { %592 = vrot.lane.b32.xlu1 %v2575_v57, %s2472_s29 }
 0x426   :  { %504 = vrot.lane.b32.xlu0 %v2531_v14, %s2473_s30 }
 0x429   :  { %590 = vrot.lane.b32.xlu1 %v2575_v57, %s2474_s5 }
 0x42a   :  { %668 = vrot.lane.b32.xlu0 %v2573_v55, %s2474_s5 }
 0x42d   :  { %670 = vrot.lane.b32.xlu1 %v2573_v55, %s2472_s29 }
 0x499   :  { %v343_v17 = vpop.xlane.xlu0 %342 }
 0x49a   :  { %2408 = vrcp.f32 %v343_v17 }
 0x49d   :  { %v346_v19 = vpop.xlane.xlu1 %345  ;;  %v352_v20 = vpop.permute.xlu0 %351 }
 0x49e   :  { %2410 = vrcp.f32 %v346_v19  ;;  %2220 = vmatpush3.msra.mxu0 %v352_v20 }
 0x4a1   :  { %v428_v21 = vpop.permute.xlu1 %427  ;;  %v505_v22 = vpop.permute.xlu0 %504 }
 0x4a2   :  { %2225 = vmatpush3.msra.mxu1 %v428_v21  ;;  %2229 = vmatprep.subr.mxu0 %v505_v22 }
 0x4a3   :  { %2234 = vmatprep.subr.mxu1 %v2468_v51 }
 0x4a4   :  { %v2409_v14 = vpop.eup %2408 }
 0x4a5   :  { %v349_v23 = vmul.f32 %v2409_v14, %v2405_v10  ;;  %v593_v25 = vpop.permute.xlu1 %592  ;;  %v669_v34 = vpop.permute.xlu0 %668 }
 0x4a7   :  { %2222 = vmatmul.mubr.msk.f32.vlgmr.msra.gmra.mrb[0].mxu0 %vm177_vm6, %v349_v23 }
 0x4a8   :  { %v2411_v24 = vpop.eup %2410  ;;  %2230 = vmatpush3.msra.mxu0 %v505_v22 }
 0x4a9   :  { %v350_v26 = vmul.f32 %v2411_v24, %v2407_v12  ;;  %2239 = vmatprep.subr.mxu0 %v2468_v51  ;;  %v591_v27 = vpop.permute.xlu1 %590 }
 0x4ab   :  { %2227 = vmatmul.mubr.msk.f32.vlgmr.msra.gmra.mrb[6].mxu1 %vm177_vm6, %v350_v26 }
 0x4ac   :  { %2235 = vmatpush3.xpose.msk.msra.mxu1 %vm177_vm6, %v593_v25  ;;  %2236 = vmatprep.mubr.msk.f32.mxu1 %vm2469_vm5, %v2468_v51 }
 0x4ad   :  { %2244 = vmatprep.subr.mxu1 %v2468_v51  ;;  %v671_v32 = vpop.permute.xlu1 %670 }
 0x4af   :  { %2237 = vmatmul.mubr.msk.f32.vlgmr.msra.gmra.mrb[8].mxu1 %vm177_vm6, %v591_v27 }
 0x4b0   :  { %2246 = vmatprep.mubr.msk.f32.mxu1 %vm2469_vm5, %v2468_v51 }
 0x57a   :  { %v423_v28 = vpop.f32.mrb[0].mxu0 }
 0x57b   :  { %v2223_v29 = vpop.f32.mrb[1].mxu0  ;;  %2231 = vmatprep.mubr.msk.f32.mxu0 %vm177_vm6, %v423_v28 }
 0x57e   :  { %v499_v31 = vpop.f32.mrb[6].mxu1 }
 0x57f   :  { %v2228_v33 = vpop.f32.mrb[7].mxu1  ;;  %2232 = vmatmul.mubr.msk.f32.vlgmr.msra.gmra.mrb[2].mxu0 %vm177_vm6, %v499_v31 }
 0x580   :  { %2240 = vmatpush3.xpose.msk.msra.mxu0 %vm177_vm6, %v671_v32  ;;  %2241 = vmatprep.mubr.msk.f32.mxu0 %vm2469_vm5, %v2468_v51 }
 0x581   :  { %2249 = vmatprep.subr.mxu0 %v2468_v51 }
 0x582   :  { %v664_v35 = vpop.f32.mrb[8].mxu1 }
 0x583   :  { %v2238_v36 = vpop.f32.mrb[9].mxu1  ;;  %2242 = vmatmul.mubr.msk.f32.vlgmr.msra.gmra.mrb[4].mxu0 %vm177_vm6, %v669_v34  ;;  %v746_v37 = vsel %vm177_vm6, %v664_v35, -inf }
 0x584   :  { %747 = vmax.xlane.f32.xlu1 %v746_v37  ;;  %2251 = vmatprep.mubr.msk.f32.mxu0 %vm2469_vm5, %v2468_v51 }
 0x595   :  { %1009 = vrot.lane.b32.xlu1 %v2575_v57, %s2475_s6 }
 0x599   :  { %1007 = vrot.lane.b32.xlu1 %v2575_v57, %s2476_s7 }
 0x59d   :  { %1085 = vrot.lane.b32.xlu1 %v2573_v55, %s2476_s7 }
 0x611   :  { %v748_v39 = vpop.xlane.xlu1 %747 }
 0x612   :  { %v752_v40 = vsub.f32 %v664_v35, %v748_v39 }
 0x614   :  { %v754_v41 = vmul.f32 1.442695, %v752_v40 }
 0x616   :  { %2412 = vpow2.f32 %v754_v41 }
 0x620   :  { %v2413_v42 = vpop.eup %2412 }
 0x621   :  { %v758_v43 = vsel %vm177_vm6, %v2413_v42, 0.0 }
 0x622   :  { %759 = vadd.xlane.f32.xlu0 %v758_v43 }
 0x638   :  { %768 = vrot.lane.b32.xlu0 %v2575_v57, %s2477_s8 }
 0x63c   :  { %1087 = vrot.lane.b32.xlu0 %v2573_v55, %s2475_s6 }
 0x656   :  { %v742_v44 = vpop.f32.mrb[4].mxu0 }
 0x657   :  { %v2243_v45 = vpop.f32.mrb[5].mxu0  ;;  %v749_v46 = vsel %vm177_vm6, %v742_v44, -inf }
 0x65b   :  { %750 = vmax.xlane.f32.xlu0 %v749_v46 }
 0x671   :  { %844 = vrot.lane.b32.xlu0 %v2573_v55, %s2477_s8 }
 0x675   :  { %921 = vrot.lane.b32.xlu0 %v2536_v15, %s2473_s30  ;;  %v1010_v15 = vpop.permute.xlu1 %1009 }
 0x679   :  { %1261 = vrot.lane.b32.xlu0 %v2573_v55, %s2478_s9 }
 0x67d   :  { %1338 = vrot.lane.b32.xlu0 %v2541_v16, %s2473_s30  ;;  %v1008_v16 = vpop.permute.xlu1 %1007 }
 0x681   :  { %1426 = vrot.lane.b32.xlu0 %v2575_v57, %s2479_s10  ;;  %v1086_v53 = vpop.permute.xlu1 %1085 }
 0x685   :  { %1504 = vrot.lane.b32.xlu0 %v2573_v55, %s2479_s10 }
 0x689   :  { %1502 = vrot.lane.b32.xlu0 %v2573_v55, %s2480_s11 }
 0x6af   :  { %v760_v47 = vpop.xlane.xlu0 %759 }
 0x6b0   :  { %2414 = vrcp.f32 %v760_v47 }
 0x6b3   :  { %v769_v48 = vpop.permute.xlu0 %768 }
 0x6b4   :  { %2245 = vmatpush3.msra.mxu1 %v769_v48 }
 0x6b5   :  { %2259 = vmatprep.subr.mxu1 %v2468_v51 }
 0x6b7   :  { %v1088_v52 = vpop.permute.xlu0 %1087 }
 0x6ba   :  { %v2415_v49 = vpop.eup %2414 }
 0x6bb   :  { %v766_v50 = vmul.f32 %v2415_v49, %v2413_v42 }
 0x6bd   :  { %2247 = vmatmul.mubr.msk.f32.vlgmr.msra.gmra.mrb[10].mxu1 %vm177_vm6, %v766_v50 }
 0x6be   :  { %2260 = vmatpush3.xpose.msk.msra.mxu1 %vm177_vm6, %v1010_v15  ;;  %2261 = vmatprep.mubr.msk.f32.mxu1 %vm2469_vm5, %v2468_v51 }
 0x6bf   :  { %2264 = vmatprep.subr.mxu1 %v2468_v51 }
 0x6c1   :  { %2262 = vmatmul.mubr.msk.f32.vlgmr.msra.gmra.mrb[12].mxu1 %vm177_vm6, %v1008_v16 }
 0x6c2   :  { %2265 = vmatpush3.xpose.msk.msra.mxu1 %vm177_vm6, %v1088_v52  ;;  %2266 = vmatprep.mubr.msk.f32.mxu1 %vm2469_vm5, %v2468_v51 }
 0x6c3   :  { %2274 = vmatprep.subr.mxu1 %v2468_v51 }
 0x6c5   :  { %2267 = vmatmul.mubr.msk.f32.vlgmr.msra.gmra.mrb[14].mxu1 %vm177_vm6, %v1086_v53 }
 0x6c6   :  { %2276 = vmatprep.mubr.msk.f32.mxu1 %vm2469_vm5, %v2468_v51 }
 0x6e8   :  { %v751_v54 = vpop.xlane.xlu0 %750 }
 0x6e9   :  { %v753_v56 = vsub.f32 %v742_v44, %v751_v54 }
 0x6eb   :  { %v756_v58 = vmul.f32 1.442695, %v753_v56 }
 0x6ec   :  { %v845_v59 = vpop.permute.xlu0 %844 }
 0x6ed   :  { %2416 = vpow2.f32 %v756_v58  ;;  %2250 = vmatpush3.msra.mxu0 %v845_v59 }
 0x6f0   :  { %v922_v60 = vpop.permute.xlu0 %921 }
 0x6f1   :  { %2254 = vmatprep.subr.mxu0 %v922_v60 }
 0x6f4   :  { %v1262_v61 = vpop.permute.xlu0 %1261 }
 0x6f5   :  { %2275 = vmatpush3.msra.mxu1 %v1262_v61 }
 0x6f6   :  { %2284 = vmatprep.subr.mxu1 %v2468_v51 }
 0x6f7   :  { %v2417_v62 = vpop.eup %2416 }
 0x6f8   :  { %v761_v63 = vsel %vm177_vm6, %v2417_v62, 0.0  ;;  %v1339_v32 = vpop.permute.xlu0 %1338 }
 0x6f9   :  { %762 = vadd.xlane.f32.xlu1 %v761_v63 }
 0x6fc   :  { %v1427_v37 = vpop.permute.xlu0 %1426 }
 0x700   :  { %v1505_v42 = vpop.permute.xlu0 %1504 }
 0x704   :  { %v1503_v45 = vpop.permute.xlu0 %1502 }
 0x786   :  { %v763_v2 = vpop.xlane.xlu1 %762 }
 0x787   :  { %2418 = vrcp.f32 %v763_v2 }
 0x790   :  { %v840_v3 = vpop.f32.mrb[10].mxu1 }
 0x791   :  { %v2419_v4 = vpop.eup %2418  ;;  %v2248_v5 = vpop.f32.mrb[11].mxu1 }
 0x792   :  { %v767_v6 = vmul.f32 %v2419_v4, %v2417_v62 }
 0x794   :  { %2252 = vmatmul.mubr.msk.f32.vlgmr.msra.gmra.mrb[6].mxu0 %vm177_vm6, %v767_v6  ;;  %v1081_v7 = vpop.f32.mrb[12].mxu1 }
 0x795   :  { %2256 = vmatprep.mubr.msk.f32.mxu0 %vm177_vm6, %v840_v3  ;;  %v2263_v8 = vpop.f32.mrb[13].mxu1  ;;  %v1163_v9 = vsel %vm177_vm6, %v1081_v7, -inf  ;;  %2255 = vmatpush3.msra.mxu0 %v922_v60 }
 0x796   :  { %1164 = vmax.xlane.f32.xlu1 %v1163_v9  ;;  %2269 = vmatprep.subr.mxu0 %v2468_v51 }
 0x798   :  { %v1159_v10 = vpop.f32.mrb[14].mxu1 }
 0x799   :  { %v2268_v11 = vpop.f32.mrb[15].mxu1  ;;  %v1166_v12 = vsel %vm177_vm6, %v1159_v10, -inf }
 0x79a   :  { %1167 = vmax.xlane.f32.xlu1 %v1166_v12 }
 0x823   :  { %v1165_v13 = vpop.xlane.xlu1 %1164 }
 0x824   :  { %v1169_v17 = vsub.f32 %v1081_v7, %v1165_v13 }
 0x826   :  { %v1171_v19 = vmul.f32 1.442695, %v1169_v17 }
 0x827   :  { %v1168_v20 = vpop.xlane.xlu1 %1167 }
 0x828   :  { %2420 = vpow2.f32 %v1171_v19  ;;  %v1170_v21 = vsub.f32 %v1159_v10, %v1168_v20 }
 0x82a   :  { %v1173_v22 = vmul.f32 1.442695, %v1170_v21 }
 0x82c   :  { %2422 = vpow2.f32 %v1173_v22 }
 0x832   :  { %v2421_v14 = vpop.eup %2420 }
 0x833   :  { %v1175_v23 = vsel %vm177_vm6, %v2421_v14, 0.0 }
 0x834   :  { %1176 = vadd.xlane.f32.xlu1 %v1175_v23 }
 0x836   :  { %v2423_v24 = vpop.eup %2422 }
 0x837   :  { %v1178_v25 = vsel %vm177_vm6, %v2423_v24, 0.0 }
 0x838   :  { %1179 = vadd.xlane.f32.xlu1 %v1178_v25 }
 0x849   :  { %1185 = vrot.lane.b32.xlu1 %v2575_v57, %s2478_s9 }
 0x84d   :  { %1424 = vrot.lane.b32.xlu1 %v2575_v57, %s2480_s11 }
 0x867   :  { %v916_v26 = vpop.f32.mrb[6].mxu0 }
 0x868   :  { %v2253_v27 = vpop.f32.mrb[7].mxu0  ;;  %2257 = vmatmul.mubr.msk.f32.vlgmr.msra.gmra.mrb[2].mxu0 %vm177_vm6, %v916_v26 }
 0x869   :  { %2271 = vmatprep.mubr.msk.f32.mxu0 %vm2469_vm5, %v2468_v51 }
 0x8c1   :  { %v1177_v28 = vpop.xlane.xlu1 %1176 }
 0x8c2   :  { %2424 = vrcp.f32 %v1177_v28 }
 0x8c5   :  { %v1180_v29 = vpop.xlane.xlu1 %1179 }
 0x8c6   :  { %2426 = vrcp.f32 %v1180_v29 }
 0x8c9   :  { %v1186_v31 = vpop.permute.xlu1 %1185 }
 0x8ca   :  { %2270 = vmatpush3.msra.mxu0 %v1186_v31 }
 0x8cb   :  { %2279 = vmatprep.subr.mxu0 %v1339_v32 }
 0x8cc   :  { %v2425_v33 = vpop.eup %2424 }
 0x8cd   :  { %v1183_v34 = vmul.f32 %v2425_v33, %v2421_v14  ;;  %v1425_v39 = vpop.permute.xlu1 %1424  ;;  %v23_v33 = vld [vmem:[%s2782_s1 + $0x18] sm:$0xff] }
 0x8cf   :  { %2272 = vmatmul.mubr.msk.f32.vlgmr.msra.gmra.mrb[8].mxu0 %vm177_vm6, %v1183_v34  ;;  %v25_v34 = vld [vmem:[%s2782_s1 + $0x28] sm:$0xff] }
 0x8d0   :  { %v2427_v35 = vpop.eup %2426  ;;  %2280 = vmatpush3.msra.mxu0 %v1339_v32  ;;  %v21_v32 = vld [vmem:[%s2782_s1 + $0x8] sm:$0xff] }
 0x8d1   :  { %v1184_v36 = vmul.f32 %v2427_v35, %v2423_v24  ;;  %2289 = vmatprep.subr.mxu0 %v2468_v51  ;;  %v2347_v35 = vpack.c.bf16 %v23_v33, %v21_v32 }
 0x8d3   :  { %2277 = vmatmul.mubr.msk.f32.vlgmr.msra.gmra.mrb[16].mxu1 %vm177_vm6, %v1184_v36  ;;  %v27_v36 = vld [vmem:[%s2782_s1 + $0x38] sm:$0xff] }
 0x8d4   :  { %2285 = vmatpush3.xpose.msk.msra.mxu1 %vm177_vm6, %v1427_v37  ;;  %2286 = vmatprep.mubr.msk.f32.mxu1 %vm2469_vm5, %v2468_v51  ;;  %v2351_v37 = vpack.c.bf16 %v27_v36, %v25_v34 }
 0x8d5   :  { %2294 = vmatprep.subr.mxu1 %v2468_v51 }
 0x8d7   :  { %2287 = vmatmul.mubr.msk.f32.vlgmr.msra.gmra.mrb[18].mxu1 %vm177_vm6, %v1425_v39  ;;  %v1980_v39 = vld [vmem:[%s2783_s2] sm:$0xff] }
 0x8d8   :  { %2296 = vmatprep.mubr.msk.f32.mxu1 %vm2469_vm5, %v2468_v51 }
 0x9a2   :  { %v1257_v40 = vpop.f32.mrb[8].mxu0 }
 0x9a3   :  { %v2273_v41 = vpop.f32.mrb[9].mxu0  ;;  %2281 = vmatprep.mubr.msk.f32.mxu0 %vm177_vm6, %v1257_v40  ;;  %v1981_v40 = vld [vmem:[%s2783_s2 + $0x8] sm:$0xff] }
 0x9a4   :  { %v1982_v41 = vld [vmem:[%s2783_s2 + $0x10] sm:$0xff] }
 0x9a6   :  { %v1333_v43 = vpop.f32.mrb[16].mxu1 }
 0x9a7   :  { %v2278_v44 = vpop.f32.mrb[17].mxu1  ;;  %2282 = vmatmul.mubr.msk.f32.vlgmr.msra.gmra.mrb[2].mxu0 %vm177_vm6, %v1333_v43  ;;  %v1983_v43 = vld [vmem:[%s2783_s2 + $0x18] sm:$0xff] }
 0x9a8   :  { %2290 = vmatpush3.xpose.msk.msra.mxu0 %vm177_vm6, %v1505_v42  ;;  %2291 = vmatprep.mubr.msk.f32.mxu0 %vm2469_vm5, %v2468_v51  ;;  %v2355_v42 = vpack.c.bf16 %v1981_v40, %v1980_v39  ;;  %v2359_v44 = vpack.c.bf16 %v1983_v43, %v1982_v41 }
 0x9a9   :  { %2299 = vmatprep.subr.mxu0 %v2468_v51 }
 0x9aa   :  { %v1498_v46 = vpop.f32.mrb[18].mxu1 }
 0x9ab   :  { %v2288_v47 = vpop.f32.mrb[19].mxu1  ;;  %2292 = vmatmul.mubr.msk.f32.vlgmr.msra.gmra.mrb[10].mxu0 %vm177_vm6, %v1503_v45  ;;  %v1580_v48 = vsel %vm177_vm6, %v1498_v46, -inf  ;;  %v1984_v45 = vld [vmem:[%s2783_s2 + $0x20] sm:$0xff] }
 0x9ac   :  { %1581 = vmax.xlane.f32.xlu1 %v1580_v48  ;;  %2301 = vmatprep.mubr.msk.f32.mxu0 %vm2469_vm5, %v2468_v51 }
 0x9bd   :  { %1602 = vrot.lane.b32.xlu1 %v2575_v57, %s2481_s12 }
 0x9c1   :  { %1755 = vrot.lane.b32.xlu1 %v2548_v18, %s2473_s30 }
 0xa39   :  { %v1582_v15 = vpop.xlane.xlu1 %1581 }
 0xa3a   :  { %v1586_v50 = vsub.f32 %v1498_v46, %v1582_v15  ;;  %v1985_v46 = vld [vmem:[%s2783_s2 + $0x28] sm:$0xff] }
 0xa3b   :  { %v2363_v47 = vpack.c.bf16 %v1985_v46, %v1984_v45 }
 0xa3c   :  { %v1588_v16 = vmul.f32 1.442695, %v1586_v50 }
 0xa3d   :  { %v1603_v49 = vpop.permute.xlu1 %1602 }
 0xa3e   :  { %2295 = vmatpush3.msra.mxu1 %v1603_v49  ;;  %2428 = vpow2.f32 %v1588_v16 }
 0xa3f   :  { %2348 = vmatprep.subr.bf16.mxu1 %v2347_v35 }
 0xa41   :  { %v1756_v3 = vpop.permute.xlu1 %1755 }
 0xa48   :  { %v2429_v56 = vpop.eup %2428 }
 0xa49   :  { %v1592_v51 = vsel %vm177_vm6, %v2429_v56, 0.0 }
 0xa7e   :  { %v1576_v52 = vpop.f32.mrb[10].mxu0 }
 0xa7f   :  { %v2293_v53 = vpop.f32.mrb[11].mxu0  ;;  %v1583_v54 = vsel %vm177_vm6, %v1576_v52, -inf }
 0xa80   :  { %1584 = vmax.xlane.f32.xlu0 %v1583_v54 }
 0xa84   :  { %1593 = vadd.xlane.f32.xlu0 %v1592_v51 }
 0xb0d   :  { %v1585_v58 = vpop.xlane.xlu0 %1584 }
 0xb0e   :  { %v1587_v57 = vsub.f32 %v1576_v52, %v1585_v58 }
 0xb10   :  { %v1590_v59 = vmul.f32 1.442695, %v1587_v57 }
 0xb11   :  { %v1594_v60 = vpop.xlane.xlu0 %1593 }
 0xb12   :  { %2430 = vpow2.f32 %v1590_v59 }
 0xb13   :  { %2432 = vrcp.f32 %v1594_v60 }
 0xb1c   :  { %v2431_v18 = vpop.eup %2430 }
 0xb1d   :  { %v2433_v61 = vpop.eup %2432  ;;  %v1595_v62 = vsel %vm177_vm6, %v2431_v18, 0.0 }
 0xb1e   :  { %v1600_v63 = vmul.f32 %v2433_v61, %v2429_v56  ;;  %1596 = vadd.xlane.f32.xlu0 %v1595_v62  ;;  %v1881_v62 = vsub.s32 4, %v2552_v30 }
 0xb20   :  { %2297 = vmatmul.mubr.msk.f32.vlgmr.msra.gmra.mrb[20].mxu1 %vm177_vm6, %v1600_v63  ;;  %v1882_v63 = vrot.slane %v2558_v38, %v1881_v62 }
 0xb21   :  { %2350 = vmatpush3.bf16.msra.mxu1 %v2347_v35 }
 0xb22   :  { %2352 = vmatprep.subr.bf16.mxu1 %v2351_v37 }
 0xb25   :  { %2354 = vmatpush3.bf16.msra.mxu1 %v2351_v37 }
 0xb34   :  { %1678 = vrot.lane.b32.xlu0 %v2573_v55, %s2481_s12  ;;  %v170_v55 = vsub.s32 6, %v2552_v30 }
 0xb36   :  { %v171_v11 = vrot.slane %v2558_v38, %v170_v55 }
 0xb38   :  { %v173_v12 = vadd.f32 %v171_v11, %v2518_v1  ;;  %v172_v13 = vadd.f32 %v171_v11, %v2513_v0  ;;  %v1986_v11 = vld [vmem:[%s2783_s2 + $0x30] sm:$0xff] }
 0xbab   :  { %v1597_v2 = vpop.xlane.xlu0 %1596 }
 0xbac   :  { %2434 = vrcp.f32 %v1597_v2  ;;  %v1889_v2 = vsub.s32 5, %v2552_v30 }
 0xbaf   :  { %v1679_v4 = vpop.permute.xlu0 %1678 }
 0xbb0   :  { %2300 = vmatpush3.msra.mxu0 %v1679_v4 }
 0xbb1   :  { %2304 = vmatprep.subr.mxu0 %v1756_v3 }
 0xbb6   :  { %v2435_v5 = vpop.eup %2434 }
 0xbb7   :  { %v1601_v6 = vmul.f32 %v2435_v5, %v2431_v18 }
 0xbb9   :  { %2302 = vmatmul.mubr.msk.f32.vlgmr.msra.gmra.mrb[12].mxu0 %vm177_vm6, %v1601_v6  ;;  %v1890_v6 = vrot.slane %v2558_v38, %v1889_v2 }
 0xbba   :  { %2305 = vmatpush3.msra.mxu0 %v1756_v3 }
 0xbbb   :  { %2356 = vmatprep.subr.bf16.mxu0 %v2355_v42 }
 0xbf3   :  { %v1674_v7 = vpop.f32.mrb[20].mxu1 }
 0xbf4   :  { %v2298_v8 = vpop.f32.mrb[21].mxu1  ;;  %2306 = vmatprep.mubr.msk.f32.mxu0 %vm177_vm6, %v1674_v7 }
 0xc8c   :  { %v1750_v9 = vpop.f32.mrb[12].mxu0 }
 0xc8d   :  { %v2303_v10 = vpop.f32.mrb[13].mxu0  ;;  %2307 = vmatmul.mubr.msk.f32.vlgmr.msra.gmra.mrb[2].mxu0 %vm177_vm6, %v1750_v9 }
 0xc8e   :  { %2358 = vmatpush3.bf16.msra.mxu0 %v2355_v42 }
 0xc8f   :  { %2360 = vmatprep.subr.bf16.mxu0 %v2359_v44 }
 0xc92   :  { %2362 = vmatpush3.bf16.msra.mxu0 %v2359_v44 }
 0xc93   :  { %2364 = vmatprep.subr.bf16.mxu0 %v2363_v47 }
 0xc96   :  { %2366 = vmatpush3.bf16.msra.mxu0 %v2363_v47 }
 0xd60   :  { %v2308_v17 = vpop.f32.mrb[2].mxu0 }
 0xd61   :  { %v2707_v19 = vadd.f32 %v2308_v17, %v173_v12  ;;  %v1830_v20 = vpop.f32.mrb[3].mxu0  ;;  %v1987_v12 = vld [vmem:[%s2783_s2 + $0x38] sm:$0xff]  ;;  %v1895_v17 = vsub.s32 1, %v2552_v30  ;;  %s2482_s2 = smov [#allocation2]  }
 0xd62   :  { %v2709_v21 = vadd.f32 %v1830_v20, %v172_v13  ;;  %v2367_v13 = vpack.c.bf16 %v1987_v12, %v1986_v11  ;;  %s2083_s8 = sshll.u32 %s2482_s2, 4  ;;  %s2084_s8 = int_to_ptr.vmem [resolvable:$true] %s2083_s8 }
 0xd63   :  { %v1844_v22 = vsel %vm29_vm0, %v2707_v19, 0.0  ;;  %v1896_v20 = vrot.slane %v2558_v38, %v1895_v17  ;;  %s2444_s9 = scalar_lea.vmem %s2084_s8, 256  ;;  %p2449_p1 = scmp.lt.s32.totalorder %s2084_s8, %s2084_s8 }
 0xd64   :  { %1845 = vadd.xlane.f32.xlu0 %v1844_v22  ;;  %v1841_v14 = vsel %vm29_vm0, %v2709_v21, 0.0  ;;  %2368 = vmatprep.subr.bf16.mxu0 %v2367_v13  ;;  %p2445_p0 = scmp.ne.s32.totalorder %s2084_s8, %s2444_s9  ;;  %p2450_p2 = scmp.lt.s32.totalorder %s2444_s9, %s2444_s9 }
 0xd65   :  { %1842 = vadd.xlane.f32.xlu1 %v1841_v14  ;;  %2370 = vmatpush3.bf16.msra.mxu0 %v2367_v13 }
 0xd66   :  { %p2451_p3 = por %p2450_p2, %p2449_p1 }
 0xd68   :  { %p2452_p4 = pnand %p2451_p3, %p2445_p0 }
 0xdf1   :  { %v1846_v23 = vpop.xlane.xlu0 %1845 }
 0xdf2   :  { %v1848_v24 = vmul.f32 0.03125, %v1846_v23  ;;  %v1843_v25 = vpop.xlane.xlu1 %1842 }
 0xdf3   :  { %v1847_v1 = vmul.f32 0.03125, %v1843_v25 }
 0xdf4   :  { %v1850_v0 = vsub.f32 %v2707_v19, %v1848_v24 }
 0xdf5   :  { %v1849_v26 = vsub.f32 %v2709_v21, %v1847_v1 }
 0xdf6   :  { %v1852_v27 = vmul.f32 %v1850_v0, %v1850_v0  ;;  %v1884_v3 = vmul.f32 %v1882_v63, %v1850_v0  ;;  %v1990_v0 = vsub.s32 7, %v2552_v30 }
 0xdf7   :  { %v1851_v28 = vmul.f32 %v1849_v26, %v1849_v26  ;;  %v1883_v5 = vmul.f32 %v1882_v63, %v1849_v26 }
 0xdf8   :  { %v1856_v29 = vsel %vm29_vm0, %v1852_v27, 0.0  ;;  %v1991_v26 = vrot.slane %v2558_v38, %v1990_v0 }
 0xdf9   :  { %1857 = vadd.xlane.f32.xlu1 %v1856_v29  ;;  %v1853_v31 = vsel %vm29_vm0, %v1851_v28, 0.0 }
 0xdfa   :  { %1854 = vadd.xlane.f32.xlu0 %v1853_v31 }
 0xe86   :  { %v1858_v48 = vpop.xlane.xlu1 %1857 }
 0xe87   :  { %v1860_v15 = vmul.f32 0.032258064, %v1858_v48  ;;  %v1855_v49 = vpop.xlane.xlu0 %1854 }
 0xe88   :  { %v1859_v50 = vmul.f32 0.032258064, %v1855_v49 }
 0xe89   :  { %2436 = vrsqrt.f32 %v1860_v15  ;;  %vm1870_vm7 = vcmp.eq.f32.partialorder %v1860_v15, inf  ;;  %v1873_v54 = vand.u32 2147483648, %v1860_v15  ;;  %vm1872_vm8 = vcmp.eq.f32.partialorder %v1860_v15, 0.0 }
 0xe8a   :  { %2438 = vrsqrt.f32 %v1859_v50  ;;  %vm1863_vm9 = vcmp.eq.f32.partialorder %v1859_v50, inf  ;;  %v1866_v58 = vand.u32 2147483648, %v1859_v50  ;;  %vm1865_vm10 = vcmp.eq.f32.partialorder %v1859_v50, 0.0 }
 0xe93   :  { %v2437_v16 = vpop.eup %2436 }
 0xe94   :  { %v2439_v52 = vpop.eup %2438  ;;  %v1869_v53 = vmul.f32 %v2437_v16, %v1860_v15 }
 0xe95   :  { %v1862_v56 = vmul.f32 %v2439_v52, %v1859_v50 }
 0xe96   :  { %v1871_v51 = vsel %vm1870_vm7, %v1860_v15, %v1869_v53 }
 0xe97   :  { %v1874_v57 = vsel %vm1872_vm8, %v1873_v54, %v1871_v51  ;;  %v1864_v59 = vsel %vm1863_vm9, %v1859_v50, %v1862_v56 }
 0xe98   :  { %v1876_v60 = vadd.f32 1e-06, %v1874_v57  ;;  %v1867_v18 = vsel %vm1865_vm10, %v1866_v58, %v1864_v59 }
 0xe99   :  { %v1875_v61 = vadd.f32 1e-06, %v1867_v18 }
 0xe9a   :  { %2440 = vrcp.f32 %v1876_v60 }
 0xe9b   :  { %2442 = vrcp.f32 %v1875_v61 }
 0xea4   :  { %v2441_v4 = vpop.eup %2440 }
 0xea5   :  { %v2443_v7 = vpop.eup %2442  ;;  %v1886_v8 = vmul.f32 %v2441_v4, %v1884_v3 }
 0xea6   :  { %v1885_v9 = vmul.f32 %v2443_v7, %v1883_v5 }
 0xea7   :  { %v1892_v55 = vadd.f32 %v1890_v6, %v1886_v8 }
 0xea8   :  { %v1891_v10 = vadd.f32 %v1890_v6, %v1885_v9 }
 0xeaa   :  { %2317 = vmatprep.mubr.msk.f32.mxu1 %vm29_vm0, %v1891_v10 }
 0xeab   :  { %2318 = vmatmul.mubr.msk.f32.vlgmr.msra.gmra.mrb[22].mxu1 %vm29_vm0, %v1892_v55 }
 0xf7e   :  { %v2319_v22 = vpop.f32.mrb[22].mxu1 }
 0xf7f   :  { %v1975_v14 = vadd.f32 %v2319_v22, %v1896_v20  ;;  %v1969_v23 = vpop.f32.mrb[23].mxu1 }
 0xf80   :  { %v1970_v24 = vadd.f32 %v1969_v23, %v1896_v20 }
 0xf81   :  { %v1979_v1 = vmax.f32 %v1975_v14, 0.0 }
 0xf82   :  { %v1978_v25 = vmax.f32 %v1970_v24, 0.0 }
 0xf84   :  { %2336 = vmatprep.mubr.msk.f32.mxu0 %vm1992_vm11, %v1978_v25 }
 0xf85   :  { %2337 = vmatmul.mubr.msk.f32.vlgmr.msra.gmra.mrb[14].mxu0 %vm1992_vm11, %v1979_v1 }
0x1058   :  { %v2338_v27 = vpop.f32.mrb[14].mxu0 }
0x1059   :  { %v2071_v28 = vadd.f32 %v2338_v27, %v1991_v26  ;;  %v2065_v29 = vpop.f32.mrb[15].mxu0 }
0x105a   :  { %v2066_v31 = vadd.f32 %v2065_v29, %v1991_v26 }
0x105b   :  { %v2075_v32 = vadd.f32 %v2707_v19, %v2071_v28 }
0x105c   :  { %v2074_v33 = vadd.f32 %v2709_v21, %v2066_v31 }
0x105d   :  { %2077 = vst.msk [vmem:[#allocation2 + $0x8] sm:$0xff] %vm29_vm0, %v2075_v32 }
0x105e   :  { %2076 = vst.msk [vmem:[#allocation2] sm:$0xff] %vm29_vm0, %v2074_v33 }
0x105f   :  { %2455 = shalt.err (!%p2452_p4)
}
0x1060   :  { %s2456_s12 = scalar_lea.hbm %s2785_s4, 256 }
0x1061   :  { %p2457_p5 = scmp.ne.s32.totalorder %s2785_s4, %s2456_s12  ;;  %p2460_p6 = scmp.lt.u32.totalorder %s2456_s12, %s2785_s4 }
0x1063   :  { %p2462_p7 = pnand %p2460_p6, %p2457_p5 }
0x1065   :  { %2465 = shalt.err (!%p2462_p7)
}
0x1066   :  { %s2483_s17 = smov 128   ;;  %s2484_s18 = smov 8  }
0x1067   :  { %2089 = dma.vmem_to_hbm [thread:$0]  %s2084_s8, 256, %s2785_s4, [#allocation3], %s2483_s17, %s2483_s17, %s2484_s18  }
0x1068   :  { %2466 = dma.done.wait [#allocation3], 256  }
0x1069   :  { %2467 = vsyncadd [#allocation3], 4294967040 }
0x106a   :  { %2093 = vsyncpa [#allocation3], 1 }

</bundles_post_ra>
